<compile_context>
chip_gen: v5e
topology: v5e:2x2
jax: 0.10.0
libtpu: 0.0.40
codegen_flags: <defaults>
</compile_context>

<pallas_src>
import jax
import jax.numpy as jnp
from jax.experimental import pallas as pl
from jax.experimental.pallas import tpu as pltpu


def _round_up(x, m):
    return (x + m - 1) // m * m


def _patch_embed_kernel(a_ref, w_ref, b_ref, o_ref):
    # a_ref: (TM, Kp) bf16 patch-matrix tile
    # w_ref: (Kp, Np) bf16 projection weight (resident across the grid)
    # b_ref: (1, Np)  f32 bias
    # o_ref: (TM, Np) output tile (out_dtype)
    acc = jnp.dot(a_ref[...], w_ref[...], preferred_element_type=jnp.float32)
    o_ref[...] = (acc + b_ref[...]).astype(o_ref.dtype)


def _vmem_budget_and_limit():
    """Generation-aware VMEM budget (bytes) for tiles + scoped limit."""
    try:
        cap = int(pltpu.get_tpu_info().vmem_capacity_bytes)
    except Exception:
        cap = 64 << 20  # conservative: smallest physical VMEM (v7x per-TC)
    # ~1/3 of physical for pipelined tiles, capped at 40 MiB; leave headroom
    # for Mosaic internal scratch via the scoped limit.
    budget = max(12 << 20, min(cap // 3, 40 << 20))
    limit = int(min(budget * 2, cap * 3 // 4))
    return budget, limit


def _choose_tm(M, Kp, Np, a_bytes, out_bytes, budget_bytes):
    """Pick an M-tile that keeps pipelined A/W/O tiles under budget."""
    # Weight + bias: the pipeliner double-buffers them even though their
    # index_map is constant (we deliberately don't rely on pl.Buffered(1)).
    fixed = 2 * Kp * Np * a_bytes + 2 * Np * 4
    # Per output row, double-buffered: A row in + O row out.
    per_row = 2 * (Kp * a_bytes + Np * out_bytes)
    avail = budget_bytes - fixed
    # Fail loudly instead of silently producing a degenerate grid.
    assert avail >= per_row * 16, (
        "patch_embed: projection weight tile too large for the VMEM budget; "
        "needs N/K tiling")  # TODO(synk): add an N grid axis for huge K*D.
    tm = avail // per_row
    # Keep at least 2 grid steps on big problems so the parallel M axis can be
    # sharded across 2 TensorCores (v7x megacore).
    if M >= 1024:
        tm = min(tm, _round_up((M + 1) // 2, 256))
    tm = min(tm, 4096, _round_up(M, 16))
    if tm >= 256:
        tm = tm // 256 * 256       # MXU-cadence friendly
    elif tm >= 128:
        tm = 128
    else:
        tm = max(16, tm // 16 * 16)  # bf16 packs 2 rows/sublane -> 16-mult
    return int(tm)


def patch_embed(x, weight, bias, patch_size, out_dtype=jnp.bfloat16):
    """x: (B, C, H, W); weight: (D, C, p, p); bias: (D,). Returns (B, L, D)."""
    B, C, H, W = x.shape
    D = weight.shape[0]
    p = patch_size
    assert H % p == 0 and W % p == 0
    Hp, Wp = H // p, W // p
    L = Hp * Wp

    # --- glue: bf16 FIRST, then build the patch matrix, features = (kh,kw,c).
    xb = x.astype(jnp.bfloat16)
    wb = weight.astype(jnp.bfloat16)

    # NCHW -> NHWC (cheap layout change), then only swap the inner (p, Wp)
    # axes; the trailing (p, C) block stays contiguous.
    xh = jnp.transpose(xb, (0, 2, 3, 1))                   # (B, H, W, C)
    xh = xh.reshape(B, Hp, p, Wp, p, C)
    a = jnp.transpose(xh, (0, 1, 3, 2, 4, 5)).reshape(B * L, p * p * C)

    # Conv weight (D, C, p, p) -> (kh, kw, C, D) -> (K, D), matching A's order.
    wm = jnp.transpose(wb, (2, 3, 1, 0)).reshape(p * p * C, D)

    M, K = a.shape
    N = D
    out_bytes = jnp.dtype(out_dtype).itemsize

    # Lane-align K and N (multiples of 128). No padding along M.
    Kp = _round_up(K, 128)
    Np = _round_up(N, 128)

    a_pad = a if Kp == K else jnp.pad(a, ((0, 0), (0, Kp - K)))
    w_pad = wm if (Kp == K and Np == N) else jnp.pad(
        wm, ((0, Kp - K), (0, Np - N)))
    b_pad = jnp.pad(bias.astype(jnp.float32), (0, Np - N)).reshape(1, Np)

    budget, vmem_limit = _vmem_budget_and_limit()
    TM = _choose_tm(M, Kp, Np, a_bytes=2, out_bytes=out_bytes,
                    budget_bytes=budget)
    grid_m = pl.cdiv(M, TM)

    cost = pl.CostEstimate(
        flops=2 * M * Kp * Np,
        transcendentals=0,
        bytes_accessed=M * Kp * 2 + Kp * Np * 2 + Np * 4 + M * Np * out_bytes,
    )

    out = pl.pallas_call(
        _patch_embed_kernel,
        out_shape=jax.ShapeDtypeStruct((M, Np), out_dtype),
        grid_spec=pltpu.PrefetchScalarGridSpec(
            num_scalar_prefetch=0,
            grid=(grid_m,),
            in_specs=[
                pl.BlockSpec((TM, Kp), lambda i: (i, 0)),   # A tile (pipelined)
                pl.BlockSpec((Kp, Np), lambda i: (0, 0)),   # weight (resident)
                pl.BlockSpec((1, Np), lambda i: (0, 0)),    # bias   (resident)
            ],
            out_specs=pl.BlockSpec((TM, Np), lambda i: (i, 0)),
        ),
        compiler_params=pltpu.CompilerParams(
            dimension_semantics=("parallel",),
            vmem_limit_bytes=vmem_limit,
        ),
        cost_estimate=cost,
    )(a_pad, w_pad, b_pad)

    if Np != N:
        out = out[:, :N]
    return out.reshape(B, L, D)


if __name__ == "__main__":
    # Small deterministic example consistent with the module.
    B, C, H, W = 2, 4, 16, 16
    patch_size = 4
    embed_dim = 32

    key = jax.random.PRNGKey(0)
    kx, kw, kb = jax.random.split(key, 3)

    x = jax.random.normal(kx, (B, C, H, W), dtype=jnp.float32)
    # Deterministic synthetic Conv2d params (shapes as in nn.Conv2d(C, D, p, p)).
    weight = jax.random.normal(kw, (embed_dim, C, patch_size, patch_size),
                               dtype=jnp.float32) * 0.02
    bias = jax.random.normal(kb, (embed_dim,), dtype=jnp.float32) * 0.02

    y = patch_embed(x, weight, bias, patch_size)
    y = jax.block_until_ready(y)

    # Sanity check against a pure-JAX f32 reference (strided conv via dot).
    Hp, Wp = H // patch_size, W // patch_size
    a_ref = x.reshape(B, C, Hp, patch_size, Wp, patch_size)
    a_ref = jnp.transpose(a_ref, (0, 2, 4, 1, 3, 5)).reshape(B * Hp * Wp, -1)
    ref = (a_ref @ weight.reshape(embed_dim, -1).T + bias).reshape(
        B, Hp * Wp, embed_dim)

    assert y.shape == (B, Hp * Wp, embed_dim)
    assert y.dtype == jnp.bfloat16
    # bf16 operands + bf16 output storage (f32 accumulation) -> loose tolerance.
    assert jnp.allclose(y.astype(jnp.float32), ref, atol=2e-2, rtol=2e-2)

    print("KERNEL_OK")
</pallas_src>

<mosaic_0001>
module attributes {stable_mosaic.version = 11 : i64} {
  func.func @_patch_embed_kernel(%arg0: i32, %arg1: memref<32x128xbf16, #tpu.memory_space<vmem>>, %arg2: memref<128x128xbf16, #tpu.memory_space<vmem>>, %arg3: memref<1x128xf32, #tpu.memory_space<vmem>>, %arg4: memref<32x128xbf16, #tpu.memory_space<vmem>>) attributes {dimension_semantics = [#tpu.dimension_semantics<parallel>], iteration_bounds = array<i64: 1>, scalar_prefetch = 0 : i64, scratch_operands = 0 : i64, tpu.core_type = #tpu.core_type<tc>, window_params = [{transform_indices = @transform_0, window_bounds = array<i64: 32, 128>}, {pipeline_mode = #tpu.pipeline_mode<synchronous>, transform_indices = @transform_1, window_bounds = array<i64: 128, 128>}, {pipeline_mode = #tpu.pipeline_mode<synchronous>, transform_indices = @transform_2, window_bounds = array<i64: 1, 128>}, {transform_indices = @transform_3, window_bounds = array<i64: 32, 128>}]} {
    %c0 = arith.constant 0 : index
    %c0_0 = arith.constant 0 : index
    %0 = vector.load %arg1[%c0, %c0_0] : memref<32x128xbf16, #tpu.memory_space<vmem>>, vector<32x128xbf16>
    %c0_1 = arith.constant 0 : index
    %c0_2 = arith.constant 0 : index
    %1 = vector.load %arg2[%c0_1, %c0_2] : memref<128x128xbf16, #tpu.memory_space<vmem>>, vector<128x128xbf16>
    %cst = arith.constant dense<0.000000e+00> : vector<32x128xf32>
    %2 = tpu.matmul %0, %1, %cst {dimension_numbers = #tpu.dot_dimension_numbers<[1], [0], [0], [1], [0, 0, 1, 1], [], []>} : vector<32x128xbf16>, vector<128x128xbf16>, vector<32x128xf32> -> vector<32x128xf32>
    %c0_3 = arith.constant 0 : index
    %c0_4 = arith.constant 0 : index
    %3 = vector.load %arg3[%c0_3, %c0_4] : memref<1x128xf32, #tpu.memory_space<vmem>>, vector<1x128xf32>
    %4 = vector.broadcast %3 : vector<1x128xf32> to vector<32x128xf32>
    %5 = arith.addf %2, %4 : vector<32x128xf32>
    %6 = arith.truncf %5 : vector<32x128xf32> to vector<32x128xbf16>
    %c0_5 = arith.constant 0 : index
    %c0_6 = arith.constant 0 : index
    %7 = vector.load %arg4[%c0_5, %c0_6] : memref<32x128xbf16, #tpu.memory_space<vmem>>, vector<32x128xbf16>
    tpu.vector_store %arg4[%c0_5, %c0_6], %6 {strides = array<i32>} : memref<32x128xbf16, #tpu.memory_space<vmem>>, vector<32x128xbf16>,
    return
  }
  func.func @transform_0(%arg0: i32) -> (i32, i32) {
    %c0_i32 = arith.constant 0 : i32
    %c0_i32_0 = arith.constant 0 : i32
    return %arg0, %c0_i32 : i32, i32
  }
  func.func @transform_1(%arg0: i32) -> (i32, i32) {
    %c0_i32 = arith.constant 0 : i32
    %c0_i32_0 = arith.constant 0 : i32
    %c0_i32_1 = arith.constant 0 : i32
    return %c0_i32, %c0_i32_0 : i32, i32
  }
  func.func @transform_2(%arg0: i32) -> (i32, i32) {
    %c0_i32 = arith.constant 0 : i32
    %c0_i32_0 = arith.constant 0 : i32
    %c0_i32_1 = arith.constant 0 : i32
    return %c0_i32, %c0_i32_0 : i32, i32
  }
  func.func @transform_3(%arg0: i32) -> (i32, i32) {
    %c0_i32 = arith.constant 0 : i32
    %c0_i32_0 = arith.constant 0 : i32
    return %arg0, %c0_i32 : i32, i32
  }
}

</mosaic_0001>

<bundles_post_ra>
// kernel: tpu_custom_call.1
= control target key start
LH: loop header
LB: loop body
LE: loop exit
PB: predicated region body
PF: predicated region fallthrough
CT: control target
= control target key end

     0   :  { %8 = vsyncpa [#allocation3], 0  ;;  %s377_s0 = inlined_call_operand.hbm [shape: bf16[32,128], index: 0, kind: input, shape index: {}]   ;;  %s378_s1 = inlined_call_operand.hbm [shape: bf16[128,128], index: 1, kind: input, shape index: {}]   ;;  %s379_s2 = inlined_call_operand.vmem [shape: f32[1,128], index: 2, kind: input, shape index: {}]   ;;  %s380_s3 = inlined_call_operand.hbm [shape: bf16[32,128], index: 3, kind: output, shape index: {}]  }
   0x1   :  { %9 = vsyncpa [#allocation6], 0 }
   0x2   :  { %10 = vsyncpa [#allocation4], 0  ;;  %s15_s14 = sshll.u32 %s377_s0, 4  ;;  %s331_s15 = smov [#allocation2]   ;;  %s16_s14 = int_to_ptr.hbm [resolvable:$true] %s15_s14 }
   0x3   :  { %s17_s16 = sshll.u32 %s331_s15, 4  ;;  %s28_s19 = sshll.u32 %s378_s1, 4  ;;  %s18_s16 = int_to_ptr.vmem [resolvable:$true] %s17_s16  ;;  %s29_s19 = int_to_ptr.hbm [resolvable:$true] %s28_s19 }
   0x4   :  { %s332_s20 = smov 64   ;;  %s333_s21 = smov 4  }
   0x5   :  { %23 = dma.hbm_to_vmem [thread:$0]  %s16_s14, 256, %s18_s16, [#allocation3], %s332_s20, %s332_s20, %s333_s21  }
   0x6   :  { %s334_s22 = smov [#allocation5]  }
   0x7   :  { %s30_s23 = sshll.u32 %s334_s22, 4  ;;  %s31_s23 = int_to_ptr.vmem [resolvable:$true] %s30_s23 }
   0x8   :  { %36 = dma.hbm_to_vmem [thread:$0]  %s29_s19, 1024, %s31_s23, [#allocation6], %s332_s20, %s332_s20, %s333_s21  }
   0x9   :  { %325 = dma.done.wait [#allocation3], 256  }
   0xa   :  { %326 = vsyncadd [#allocation3], 4294967040 }
   0xb   :  { %327 = dma.done.wait [#allocation6], 1024  }
   0xc   :  { %328 = vsyncadd [#allocation6], 4294966272  ;;  %v227_v0 = vld [vmem:[#allocation5 + $0x38] sm:$0xff]  ;;  %v226_v1 = vld [vmem:[#allocation5 + $0x30] sm:$0xff]  ;;  %s335_s24 = smov [#allocation7]   ;;  %s164_s28 = sshll.u32 %s380_s3, 4  ;;  %s165_s28 = int_to_ptr.hbm [resolvable:$true] %s164_s28 }
   0xd   :  { %131 = vmatpush.bf16.msra.mxu0 %v227_v0  ;;  %239 = vmatpush.bf16.msra.mxu1 %v227_v0  ;;  %v225_v2 = vld [vmem:[#allocation5 + $0x28] sm:$0xff]  ;;  %v224_v3 = vld [vmem:[#allocation5 + $0x20] sm:$0xff]  ;;  %v223_v4 = vld [vmem:[#allocation5 + $0x18] sm:$0xff]  ;;  %s162_s25 = sshll.u32 %s335_s24, 4  ;;  %s163_s25 = int_to_ptr.vmem [resolvable:$true] %s162_s25 }
   0xe   :  { %v222_v5 = vld [vmem:[#allocation5 + $0x10] sm:$0xff]  ;;  %v221_v6 = vld [vmem:[#allocation5 + $0x8] sm:$0xff]  ;;  %v220_v7 = vld [vmem:[#allocation5] sm:$0xff] }
   0xf   :  { %v218_v8 = vld [vmem:[#allocation2] sm:$0xff]  ;;  %v219_v9 = vld [vmem:[#allocation2 + $0x8] sm:$0xff] }
  0x10   :  { %v252_v12 = vld [vmem:[%s379_s2] ss:$0 sm:$0xff] }
  0x11   :  { %132 = vmatpush.bf16.msra.mxu0 %v226_v1  ;;  %240 = vmatpush.bf16.msra.mxu1 %v226_v1 }
  0x15   :  { %133 = vmatpush.bf16.msra.mxu0 %v225_v2  ;;  %241 = vmatpush.bf16.msra.mxu1 %v225_v2 }
  0x19   :  { %134 = vmatpush.bf16.msra.mxu0 %v224_v3  ;;  %242 = vmatpush.bf16.msra.mxu1 %v224_v3 }
  0x1d   :  { %135 = vmatpush.bf16.msra.mxu0 %v223_v4  ;;  %243 = vmatpush.bf16.msra.mxu1 %v223_v4 }
  0x21   :  { %136 = vmatpush.bf16.msra.mxu0 %v222_v5  ;;  %244 = vmatpush.bf16.msra.mxu1 %v222_v5 }
  0x25   :  { %137 = vmatpush.bf16.msra.mxu0 %v221_v6  ;;  %245 = vmatpush.bf16.msra.mxu1 %v221_v6 }
  0x29   :  { %138 = vmatpush.bf16.msra.mxu0 %v220_v7  ;;  %246 = vmatpush.bf16.msra.mxu1 %v220_v7 }
  0x2c   :  { %139 = vmatmul.bf16.vlgmr.msra.gmra.mxu0 %v218_v8  ;;  %144 = vmatmul.bf16.vlgmr.msra.gmra.mxu1 %v219_v9 }
  0xa9   :  { %v140_v10 = vpop.f32.mrf.mxu0  ;;  %v145_v11 = vpop.f32.mrf.mxu1 }
  0xaa   :  { %v141_v15 = vadd.f32 %v252_v12, %v140_v10  ;;  %v146_v16 = vadd.f32 %v252_v12, %v145_v11 }
  0xb1   :  { %v142_v13 = vpop.f32.mrf.mxu0  ;;  %v147_v14 = vpop.f32.mrf.mxu1 }
  0xb2   :  { %v143_v17 = vadd.f32 %v252_v12, %v142_v13  ;;  %v148_v18 = vadd.f32 %v252_v12, %v147_v14 }
  0xb4   :  { %v231_v19 = vpack.c.bf16 %v143_v17, %v141_v15  ;;  %v236_v20 = vpack.c.bf16 %v148_v18, %v146_v16 }
  0xb6   :  { %232 = vst [vmem:[#allocation7] sm:$0xff] %v231_v19  }
  0xb7   :  { %238 = vst [vmem:[#allocation7 + $0x8] sm:$0xff] %v236_v20  }
  0xb8   :  { %170 = dma.vmem_to_hbm [thread:$0]  %s163_s25, 256, %s165_s28, [#allocation4], %s332_s20, %s332_s20, %s333_s21  }
  0xb9   :  { %329 = dma.done.wait [#allocation4], 256  }
  0xba   :  { %330 = vsyncadd [#allocation4], 4294967040 }
  0xbb   :  { %175 = vsyncpa [#allocation3], 1 }
  0xbc   :  { %176 = vsyncpa [#allocation6], 1 }
  0xbd   :  { %177 = vsyncpa [#allocation4], 1 }

</bundles_post_ra>
